<compile_context>
chip_gen: v5e
topology: v5e:2x2
jax: 0.10.0
libtpu: 0.0.40
codegen_flags: <defaults>
</compile_context>

<pallas_src>
import numpy as np
import jax
import jax.numpy as jnp
from jax.experimental import pallas as pl
from jax.experimental.pallas import tpu as pltpu


def _round_up(x, m):
    return ((x + m - 1) // m) * m


# ----------------------------------------------------------------------------
# Kernel 1: sigmoid over the text-kernel map (torch.sigmoid(kernel)).
# Its only consumer in the reference is the host cv2 stage (untranslatable);
# kept here (properly tiled) so the device side of that stage is represented.
# ----------------------------------------------------------------------------
def _sigmoid_kernel(x_ref, o_ref):
    o_ref[...] = jax.nn.sigmoid(x_ref[...])


def sigmoid_pallas(kernels):
    B, H, W = kernels.shape
    th = H if H <= 512 else 512          # (8,128)-safe: full dim or multiple of 8
    return pl.pallas_call(
        _sigmoid_kernel,
        out_shape=jax.ShapeDtypeStruct((B, H, W), kernels.dtype),
        grid=(B, pl.cdiv(H, th)),
        in_specs=[pl.BlockSpec((1, th, W), lambda b, h: (b, h, 0))],
        out_specs=pl.BlockSpec((1, th, W), lambda b, h: (b, h, 0)),
        compiler_params=pltpu.CompilerParams(
            dimension_semantics=("parallel", "parallel")),
    )(kernels)


# ----------------------------------------------------------------------------
# TPS solve: tiny (k+3)x(k+3) system (host/XLA glue, mirrors torch.solve(Z, L)).
# ----------------------------------------------------------------------------
def tps_solve(X, Y):
    """X, Y: (k, 2) normalized control points. Returns Q = [W; A], (k+3, 2)."""
    k = X.shape[0]
    eps = 1e-9
    D2 = jnp.sum((X[:, None, :] - X[None, :, :]) ** 2, axis=-1)
    K = D2 * jnp.log(D2 + eps)
    P = jnp.concatenate([jnp.ones((k, 1), X.dtype), X], axis=1)
    L = jnp.zeros((k + 3, k + 3), X.dtype)
    L = L.at[:k, :k].set(K)
    L = L.at[:k, k:].set(P)
    L = L.at[k:, :k].set(P.T)
    Z = jnp.zeros((k + 3, 2), X.dtype).at[:k, :].set(Y)
    return jnp.linalg.solve(L, Z)


# ----------------------------------------------------------------------------
# Kernel 2 (fused): TPS warped-grid evaluation + grid_sample(bilinear, zeros,
# align_corners=True) as a tiled MXU contraction with lane-dense output.
#   grid = (Nout blocks [parallel], Nin blocks [arbitrary reduction])
#   out(C, TILE_NOUT) += F(C, TILE_NIN) @ M^T(TILE_NIN, TILE_NOUT)
# ----------------------------------------------------------------------------
def _make_tps_grid_sample_kernel(Hin, Win, Hgrid, Wgrid, k, tile_nout, tile_nin):
    inv_w = 2.0 / max(Wgrid - 1, 1)      # linspace(-1, 1, Wgrid) step
    inv_h = 2.0 / max(Hgrid - 1, 1)      # linspace(-1, 1, Hgrid) step
    half_x = 0.5 * (Win - 1)             # align_corners=True unnormalize
    half_y = 0.5 * (Hin - 1)

    def kernel(params_ref, f_ref, o_ref, acc_ref):
        # params (SMEM, scalar-prefetch): [Xx(k), Xy(k), Wx(k), Wy(k),
        #                                  a0x,a1x,a2x, a0y,a1y,a2y]
        i = pl.program_id(0)             # Nout block
        j = pl.program_id(1)             # Nin block (reduction)

        @pl.when(j == 0)
        def _init():
            acc_ref[...] = jnp.zeros_like(acc_ref)

        # ---- output-pixel coordinates for this tile (pixels on lanes) ----
        p = jax.lax.broadcasted_iota(jnp.int32, (1, tile_nout), 1) + i * tile_nout
        row = (p // Wgrid).astype(jnp.float32)
        col = (p % Wgrid).astype(jnp.float32)
        gx = col * inv_w - 1.0
        gy = row * inv_h - 1.0

        # ---- TPS warp: affine + thin-plate radial basis (k small, unrolled) ----
        wx = (params_ref[4 * k + 0] + params_ref[4 * k + 1] * gx
              + params_ref[4 * k + 2] * gy)
        wy = (params_ref[4 * k + 3] + params_ref[4 * k + 4] * gx
              + params_ref[4 * k + 5] * gy)
        for cp in range(k):
            dx = gx - params_ref[cp]
            dy = gy - params_ref[k + cp]
            d2 = dx * dx + dy * dy
            u = d2 * jnp.log(d2 + 1e-9)
            wx = wx + params_ref[2 * k + cp] * u
            wy = wy + params_ref[3 * k + cp] * u

        # ---- bilinear weights / corner indices (per output pixel) ----
        x = (wx + 1.0) * half_x
        y = (wy + 1.0) * half_y
        x0 = jnp.floor(x)
        y0 = jnp.floor(y)
        fx = x - x0
        fy = y - y0
        x0i = x0.astype(jnp.int32)
        y0i = y0.astype(jnp.int32)

        # flattened input-pixel indices for this Nin tile (on sublanes)
        iidx = jax.lax.broadcasted_iota(jnp.int32, (tile_nin, 1), 0) + j * tile_nin

        def corner(cxi, cyi, w):
            valid = (cxi >= 0) & (cxi < Win) & (cyi >= 0) & (cyi < Hin)
            ci = jnp.where(valid, cyi * Win + cxi, -1)        # (1, tile_nout)
            return jnp.where(iidx == ci, w, 0.0)              # (tile_nin, tile_nout)

        mt = (corner(x0i, y0i, (1.0 - fx) * (1.0 - fy))
              + corner(x0i + 1, y0i, fx * (1.0 - fy))
              + corner(x0i, y0i + 1, (1.0 - fx) * fy)
              + corner(x0i + 1, y0i + 1, fx * fy))

        acc_ref[...] += jnp.dot(f_ref[...], mt,
                                preferred_element_type=jnp.float32)

        @pl.when(j == pl.num_programs(1) - 1)
        def _finalize():
            o_ref[...] = acc_ref[...].astype(o_ref.dtype)

    return kernel


def tps_grid_sample_pallas(line_feature, X_target, Q, Hgrid, Wgrid, out_rows):
    """line_feature: (C, Hin, Win).  X_target: (k, 2) normalized TPS control
    points.  Q: (k+3, 2) TPS coefficients.  Evaluates the warped grid over the
    (Hgrid, Wgrid) output lattice but only for the first `out_rows` rows (the
    `[:max_box_height]` crop), and bilinearly samples line_feature there.
    Returns (C, out_rows, Wgrid)."""
    C, Hin, Win = line_feature.shape
    k = X_target.shape[0]
    Nin = Hin * Win
    Nout = out_rows * Wgrid

    tile_nout = min(256, _round_up(Nout, 128))
    tile_nin = min(512, _round_up(Nin, 128))
    nout_pad = _round_up(Nout, tile_nout)
    nin_pad = _round_up(Nin, tile_nin)

    feat = jnp.asarray(line_feature, jnp.float32).reshape(C, Nin)
    if nin_pad > Nin:
        feat = jnp.pad(feat, ((0, 0), (0, nin_pad - Nin)))

    Q = jnp.asarray(Q, jnp.float32)
    params = jnp.concatenate([
        jnp.asarray(X_target[:, 0], jnp.float32),   # Xx
        jnp.asarray(X_target[:, 1], jnp.float32),   # Xy
        Q[:k, 0], Q[:k, 1],                         # Wx, Wy
        Q[k:, 0], Q[k:, 1],                         # a0x,a1x,a2x, a0y,a1y,a2y
    ]).astype(jnp.float32)

    grid = (nout_pad // tile_nout, nin_pad // tile_nin)
    out = pl.pallas_call(
        _make_tps_grid_sample_kernel(Hin, Win, Hgrid, Wgrid, k,
                                     tile_nout, tile_nin),
        out_shape=jax.ShapeDtypeStruct((C, nout_pad), jnp.float32),
        grid_spec=pltpu.PrefetchScalarGridSpec(
            num_scalar_prefetch=1,
            grid=grid,
            in_specs=[pl.BlockSpec((C, tile_nin), lambda i, j, prm: (0, j))],
            out_specs=pl.BlockSpec((C, tile_nout), lambda i, j, prm: (0, i)),
            scratch_shapes=[pltpu.VMEM((C, tile_nout), jnp.float32)]),
        compiler_params=pltpu.CompilerParams(
            dimension_semantics=("parallel", "arbitrary"),
            vmem_limit_bytes=48 * 1024 * 1024),
    )(params, feat)

    out = out[:, :Nout].reshape(C, out_rows, Wgrid)
    return out.astype(line_feature.dtype)


# ----------------------------------------------------------------------------
# Kernel 3: F.interpolate(bilinear, align_corners=True) as separable matmuls,
# channels flattened into the big width-resize matmul.
# ----------------------------------------------------------------------------
def _interp_matrix(out_n, in_n):
    M = np.zeros((out_n, in_n), np.float32)
    if out_n == 1 or in_n == 1:
        M[:, 0] = 1.0
        return M
    src = np.arange(out_n, dtype=np.float64) * (in_n - 1) / (out_n - 1)
    i0 = np.clip(np.floor(src).astype(np.int64), 0, in_n - 1)
    i1 = np.minimum(i0 + 1, in_n - 1)
    frac = (src - i0).astype(np.float32)
    for i in range(out_n):
        M[i, i0[i]] += 1.0 - frac[i]
        M[i, i1[i]] += frac[i]
    return M


def _make_resize_kernel(cb, hin, win, out_h, out_w):
    def kernel(x_ref, ry_ref, rxt_ref, o_ref):
        # height resize (batched over channels; Ry broadcast is tiny)
        ry_b = jnp.broadcast_to(ry_ref[...], (cb, out_h, hin))
        t = jnp.einsum('coh,chw->cow', ry_b, x_ref[...],
                       preferred_element_type=jnp.float32)          # (cb,out_h,win)
        # width resize as ONE flattened MXU matmul: (cb*out_h, win)@(win, out_w)
        y = jnp.dot(t.reshape(cb * out_h, win), rxt_ref[...],
                    preferred_element_type=jnp.float32)
        o_ref[...] = y.reshape(cb, out_h, out_w).astype(o_ref.dtype)
    return kernel


def resize_bilinear_pallas(x, out_h, out_w):
    """x: (C, Hin, Win) -> (C, out_h, out_w), bilinear, align_corners=True."""
    C, Hin, Win = x.shape
    cb = C if C <= 32 else 32
    c_pad = _round_up(C, cb)
    xf = jnp.asarray(x, jnp.float32)
    if c_pad > C:
        xf = jnp.pad(xf, ((0, c_pad - C), (0, 0), (0, 0)))
    Ry = jnp.asarray(_interp_matrix(out_h, Hin))          # (out_h, Hin)
    Rxt = jnp.asarray(_interp_matrix(out_w, Win).T)       # (Win, out_w)
    out = pl.pallas_call(
        _make_resize_kernel(cb, Hin, Win, out_h, out_w),
        out_shape=jax.ShapeDtypeStruct((c_pad, out_h, out_w), jnp.float32),
        grid=(c_pad // cb,),
        in_specs=[pl.BlockSpec((cb, Hin, Win), lambda c: (c, 0, 0)),
                  pl.BlockSpec((out_h, Hin), lambda c: (0, 0)),
                  pl.BlockSpec((Win, out_w), lambda c: (0, 0))],
        out_specs=pl.BlockSpec((cb, out_h, out_w), lambda c: (c, 0, 0)),
        compiler_params=pltpu.CompilerParams(
            dimension_semantics=("parallel",),
            vmem_limit_bytes=48 * 1024 * 1024),
    )(xf, Ry, Rxt)
    return out[:C].astype(x.dtype)


# ----------------------------------------------------------------------------
# Host-side glue mirroring point_norm / trans_line / Connect.forward (inference)
# ----------------------------------------------------------------------------
def point_norm_np(points, width, height):
    pts = np.asarray(points, dtype=np.float32)
    x = (pts * 2.0)[..., 0] / (width - 1) - 1.0
    y = (pts * 2.0)[..., 1] / (height - 1) - 1.0
    return np.stack([x, y], axis=-1).reshape(-1, 2)


def trans_line_pallas(kernel_points, box_widths, box_heights, feature, out_height):
    """Mirrors trans_line(): crop -> TPS warp + grid_sample -> crop -> resize."""
    C, img_h, img_w = feature.shape
    kernel_points = np.array(kernel_points, dtype=np.float64)        # (P, 2, 2)
    box_heights = np.array(box_heights, dtype=np.float64)
    max_box_height = int(max(box_heights))

    pts = kernel_points.reshape(-1, 2)
    margin_x = max(0, int(pts[:, 0].min()))
    margin_y = max(0, int(pts[:, 1].min()))
    margin_w = int(pts[:, 0].max()) - margin_x + 1
    margin_h = int(pts[:, 1].max()) - margin_y + 1
    margin_w = min(margin_w, img_w - margin_x)
    margin_h = min(margin_h, img_h - margin_y)

    line_feature = feature[:, margin_y:margin_y + margin_h,
                           margin_x:margin_x + margin_w]
    pad_w = int(sum(box_widths) - margin_w)
    if pad_w > 0:
        line_feature = jnp.concatenate(
            [line_feature,
             jnp.zeros((C, margin_h, pad_w), line_feature.dtype)], axis=-1)

    kp = kernel_points.copy()
    kp[:, :, 0] -= margin_x
    kp[:, :, 1] -= margin_y
    line_h, line_w = int(line_feature.shape[1]), int(line_feature.shape[2])

    point_source, point_target = [], []
    sum_w = 0.0
    for i in range(len(kp)):
        if i > 0:
            sum_w += box_widths[i - 1]
        point_source.append(kp[i, 0])
        point_source.append(kp[i, 1])
        point_target.append([int(sum_w), 0])
        point_target.append([int(sum_w), max_box_height - 1])

    ps = point_norm_np(np.array([point_source]), line_w, line_h)   # (2P, 2) source
    pt = point_norm_np(np.array([point_target]), line_w, line_h)   # (2P, 2) target

    # TPS(X=target, Y=source): tiny linear solve (glue), grid eval fused into
    # the grid_sample kernel.
    Q = tps_solve(jnp.asarray(pt, jnp.float32), jnp.asarray(ps, jnp.float32))

    # Only the rows kept by ten_wrp[:, :max_box_height, :] are computed.
    keep_rows = min(max_box_height, line_h)
    ten_wrp = tps_grid_sample_pallas(line_feature, pt, Q, line_h, line_w, keep_rows)

    size_h = out_height
    size_w = int(line_w * out_height / max_box_height)
    return resize_bilinear_pallas(ten_wrp, size_h, size_w)          # (C, size_h, size_w)


def connect_forward_pallas(kernels, features, lines_per_image, line_height):
    """Inference branch of Connect.forward; the cv2 contour geometry is supplied
    as precomputed (trans_points, box_widths, box_heights) per line."""
    # torch.sigmoid(kernel) — consumed only by the (untranslatable) host cv2
    # stage; in production this belongs with that preprocessing path.
    _kernel_maps = sigmoid_pallas(kernels)
    del _kernel_maps

    sub_img_nums = []
    line_trans_list = []
    max_text_kernel_length = 0
    for b, lines in enumerate(lines_per_image):
        sub_img_nums.append(len(lines))
        for (tp, bw, bh) in lines:
            wrp = trans_line_pallas(tp, bw, bh, features[b], line_height)
            line_trans_list.append(wrp)
            max_text_kernel_length = max(max_text_kernel_length, int(wrp.shape[-1]))

    total_w = max_text_kernel_length + 32
    padded = [jnp.pad(w.astype(features.dtype),
                      ((0, 0), (0, 0), (16, total_w - 16 - int(w.shape[-1]))))
              for w in line_trans_list]
    out = jnp.stack(padded, axis=0)       # O(output) assembly: pad + stack
    return out, sub_img_nums


# ----------------------------------------------------------------------------
if __name__ == "__main__":
    key = jax.random.PRNGKey(0)
    k_feat, k_kern = jax.random.split(key)

    B, C, H, W = 2, 8, 32, 32
    line_height = 8
    features = jax.random.normal(k_feat, (B, C, H, W), jnp.float32)
    kernels = jax.random.normal(k_kern, (B, H, W), jnp.float32)

    # Deterministic synthetic output of get_trans_points() (cv2 geometry stand-in):
    # trans_points: (P, 2, 2) [top point, bottom point] per control column (x, y).
    lines_per_image = [
        [(np.array([[[3, 5], [3, 11]],
                    [[13, 5], [13, 11]],
                    [[25, 5], [25, 11]]], dtype=np.float64),
          [10.2, 12.4],            # box_widths
          [6.5, 7.0, 6.8])],       # box_heights
        [(np.array([[[4, 7], [4, 13]],
                    [[17, 7], [17, 13]],
                    [[30, 7], [30, 13]]], dtype=np.float64),
          [13.1, 13.3],
          [5.5, 6.0, 5.7])],
    ]

    text_kernel_tensor_features, sub_img_nums = connect_forward_pallas(
        kernels, features, lines_per_image, line_height)
    jax.block_until_ready(text_kernel_tensor_features)

    assert text_kernel_tensor_features.shape[0] == sum(sub_img_nums)
    assert text_kernel_tensor_features.shape[1] == C
    assert text_kernel_tensor_features.shape[2] == line_height
    assert bool(jnp.all(jnp.isfinite(text_kernel_tensor_features)))
    print("KERNEL_OK")
</pallas_src>

<mosaic_0001>
module attributes {stable_mosaic.version = 11 : i64} {
  func.func @_sigmoid_kernel(%arg0: i32, %arg1: i32, %arg2: memref<1x32x32xf32, #tpu.memory_space<vmem>>, %arg3: memref<1x32x32xf32, #tpu.memory_space<vmem>>) attributes {dimension_semantics = [#tpu.dimension_semantics<parallel>, #tpu.dimension_semantics<parallel>], iteration_bounds = array<i64: 2, 1>, scalar_prefetch = 0 : i64, scratch_operands = 0 : i64, tpu.core_type = #tpu.core_type<tc>, window_params = [{transform_indices = @transform_0, window_bounds = array<i64: 1, 32, 32>}, {transform_indices = @transform_1, window_bounds = array<i64: 1, 32, 32>}]} {
    %c0 = arith.constant 0 : index
    %c0_0 = arith.constant 0 : index
    %c0_1 = arith.constant 0 : index
    %0 = vector.load %arg2[%c0, %c0_0, %c0_1] : memref<1x32x32xf32, #tpu.memory_space<vmem>>, vector<1x32x32xf32>
    %1 = arith.negf %0 : vector<1x32x32xf32>
    %2 = math.exp %1 : vector<1x32x32xf32>
    %cst = arith.constant 1.000000e+00 : f32
    %3 = vector.broadcast %cst : f32 to vector<1x32x32xf32>
    %4 = arith.addf %3, %2 : vector<1x32x32xf32>
    %5 = arith.divf %3, %4 : vector<1x32x32xf32>
    %c0_2 = arith.constant 0 : index
    %c0_3 = arith.constant 0 : index
    %c0_4 = arith.constant 0 : index
    %6 = vector.load %arg3[%c0_2, %c0_3, %c0_4] : memref<1x32x32xf32, #tpu.memory_space<vmem>>, vector<1x32x32xf32>
    tpu.vector_store %arg3[%c0_2, %c0_3, %c0_4], %5 {strides = array<i32>} : memref<1x32x32xf32, #tpu.memory_space<vmem>>, vector<1x32x32xf32>,
    return
  }
  func.func @transform_0(%arg0: i32, %arg1: i32) -> (i32, i32, i32) {
    %c0_i32 = arith.constant 0 : i32
    %c0_i32_0 = arith.constant 0 : i32
    return %arg0, %arg1, %c0_i32 : i32, i32, i32
  }
  func.func @transform_1(%arg0: i32, %arg1: i32) -> (i32, i32, i32) {
    %c0_i32 = arith.constant 0 : i32
    %c0_i32_0 = arith.constant 0 : i32
    return %arg0, %arg1, %c0_i32 : i32, i32, i32
  }
}

</mosaic_0001>

<bundles_post_ra>
// kernel: tpu_custom_call.1
= control target key start
LH: loop header
LB: loop body
LE: loop exit
PB: predicated region body
PF: predicated region fallthrough
CT: control target
= control target key end

     0   :  { %6 = vsyncpa [#allocation3], 0  ;;  %s742_s0 = inlined_call_operand.hbm [shape: f32[2,32,32], index: 0, kind: input, shape index: {}]   ;;  %s743_s1 = inlined_call_operand.hbm [shape: f32[2,32,32], index: 1, kind: output, shape index: {}]  }
   0x1   :  { %8 = vsyncpa [#allocation3 + $0x1], 0 }
   0x2   :  { %9 = vsyncpa [#allocation4], 0 }
   0x3   :  { %11 = vsyncpa [#allocation4 + $0x1], 0  ;;  %s578_s6 = smov 0   ;;  %s580_s7 = smov 0  }
   0x4   :  { %s582_s8 = smov 0   ;;  %s584_s9 = smov 0  }
   0x5   :  { %s586_s10 = smov 0   ;;  %s588_s11 = smov 0  }
   0x6 LB: > { %s347_s12 = sadd.s32 4294967295, %s562_s11   ;;  %s348_s13 = sadd.s32 4294967294, %s562_s11   ;;  %s562_s11 = sphi %s588_s11, %s17_s11   ;;  %s558_s10 = sphi %s586_s10, %s762_s10   ;;  %s554_s9 = sphi %s584_s9, %s761_s9   ;;  %s550_s8 = sphi %s582_s8, %s760_s8   ;;  %s546_s7 = sphi %s580_s7, %s759_s7   ;;  %s542_s6 = sphi %s578_s6, %s758_s6  }
   0x7   : > { %s29_s14 = sadd.s32 1, %s558_s10  ;;  %s38_s15 = sadd.s32 1, %s550_s8 }
   0x8   : > { %p31_p0 = scmp.ge.s32.totalorder %s29_s14, 2  ;;  %p45_p1 = scmp.ne.s32.totalorder %s550_s8, %s546_s7 }
   0x9   : > { %p46_p2 = scmp.eq.s32.totalorder %s562_s11, 0  ;;  %p51_p3 = scmp.ne.s32.totalorder %s546_s7, %s542_s6 }
   0xa   : > { %s764_s14 = smov (%p31_p0, %s29_s14), 0  ;;  %p52_p5 = scmp.eq.s32.totalorder %s347_s12, 0 }
   0xb   : > { %p619_p4 = por %p46_p2, %p45_p1  ;;  %s33_s17 = ssub.s32 %s558_s10, %s764_s14 }
   0xc   : > { %p77_p6 = scmp.eq.s32.totalorder %s347_s12, 1  ;;  %p36_p7 = scmp.eq.s32.totalorder %s33_s17, 0 }
   0xd   : > { %p625_p8 = por %p52_p5, %p51_p3  ;;  %p83_p10 = scmp.eq.s32.totalorder %s348_s13, 1 }
   0xe   : > { %p629_p9 = por %p77_p6, %p45_p1  ;;  %p350_p12 = scmp.ge.s32.totalorder %s562_s11, 2 }
   0xf   : > { %s634_s20 = scalar_select %p36_p7, %s550_s8, %s38_s15  }
  0x10   : > { %p636_p11 = por %p83_p10, %p51_p3  ;;  %p380_p13 = scmp.lt.s32.totalorder %s562_s11, 2 }
  0x11   : > { %s103_s22 = sand.u32 1, %s550_s8   ;;  %s366_s24 = sshll.u32 %s558_s10, 5 }
  0x12   : > { %s351_s23 = sshll.u32 %s103_s22, 5  ;;  %s114_s27 = scalar_lea.hbm %s742_s0, %s366_s24 }
  0x13   : > { %s107_s28 = scalar_lea.vmem [#allocation2], %s351_s23  ;;  %s115_s30 = sshll.u32 %s114_s27, 4  ;;  %s116_s30 = int_to_ptr.hbm [resolvable:$true] %s115_s30 }
  0x14   : > { %s117_s29 = sshll.u32 %s107_s28, 4  ;;  %p373_p0 = pnand %p380_p13, %p619_p4  ;;  %s118_s29 = int_to_ptr.vmem [resolvable:$true] %s117_s29 }
  0x15   : > { %p354_p1 = scmp.ge.s32.totalorder %s562_s11, 1  ;;  %s104_s2 = scalar_lea.sflag [#allocation3], %s103_s22 }
  0x16   : > { %s564_s3 = smov 128   ;;  %s565_s4 = smov 8  }
  0x17   : > { %375 = dma.hbm_to_vmem [thread:$0]  (!%p373_p0), %s116_s30, 512, %s118_s29, %s104_s2, %s564_s3, %s564_s3, %s565_s4  }
  0x18   : > { %p125_p2 = scmp.lt.s32.totalorder %s562_s11, 3 }
  0x1a   : > { %p126_p3 = pnand %p354_p1, %p125_p2 }
  0x1b   : > { %s652_s5 = sand.u32 (!%p126_p3), 1, %s546_s7  }
  0x1c   : > { %129 = sbr.rel (%p126_p3) target bundleno = 70 (0x46), region = 24  ;;  %s355_s12 = sshll.u32 (!%p126_p3), %s652_s5, 5 }
  0x1d   : > { %s132_s13 = scalar_lea.sflag (!%p126_p3), [#allocation3], %s652_s5  ;;  %s135_s15 = scalar_lea.vmem (!%p126_p3), [#allocation2], %s355_s12 }
  0x21   : > { %533 = dma.done.wait (%p625_p8), %s132_s13, 512  }
  0x22   : > { %535 = vsyncadd (%p625_p8), %s132_s13, 4294966784  ;;  %v157_v0 = vld [vmem:[%s135_s15] sm:$0xff]  ;;  %v158_v1 = vld [vmem:[%s135_s15 + $0x8] sm:$0xff]  ;;  %vm237_vm1 = vcmask 261120   ;;  %s367_s16 = sshll.u32 %s554_s9, 5  ;;  %s154_s22 = scalar_lea.vmem [#allocation5], %s355_s12 }
  0x23   : > { %v159_v2 = vld [vmem:[%s135_s15 + $0x10] sm:$0xff]  ;;  %v357_v3 = vmul.f32 -1.442695, %v157_v0  ;;  %v358_v4 = vmul.f32 -1.442695, %v158_v1  ;;  %v160_v6 = vld [vmem:[%s135_s15 + $0x18] sm:$0xff]  ;;  %s256_s18 = scalar_lea.hbm %s743_s1, %s367_s16 }
  0x24   : > { %v359_v5 = vmul.f32 -1.442695, %v159_v2  ;;  %v360_v7 = vmul.f32 -1.442695, %v160_v6  ;;  %s257_s23 = sshll.u32 %s154_s22, 4  ;;  %s259_s24 = sshll.u32 %s256_s18, 4  ;;  %s258_s23 = int_to_ptr.vmem [resolvable:$true] %s257_s23  ;;  %s260_s24 = int_to_ptr.hbm [resolvable:$true] %s259_s24 }
  0x25   : > { %434 = vpow2.f32 %v357_v3  ;;  %s243_s25 = scalar_lea.sflag [#allocation4], %s652_s5  ;;  %s494_s26 = sshra.s32 %s260_s24, 4  ;;  %s495_s26 = int_to_ptr.hbm [resolvable:$true] %s494_s26 }
  0x26   : > { %436 = vpow2.f32 %v358_v4  ;;  %s496_s27 = scalar_lea.hbm %s495_s26, 32  ;;  %s500_s30 = scalar_lea.hbm %s743_s1, 64 }
  0x27   : > { %438 = vpow2.f32 %v359_v5  ;;  %p497_p4 = scmp.ne.s32.totalorder %s495_s26, %s496_s27  ;;  %p501_p7 = scmp.lt.s32.totalorder %s495_s26, %s743_s1 }
  0x28   : > { %440 = vpow2.f32 %v360_v7  ;;  %p502_p8 = scmp.lt.s32.totalorder %s500_s30, %s496_s27 }
  0x29   : > { %p498_p5 = pnand %p497_p4, %p629_p9 }
  0x2a   : > { %p503_p10 = por %p502_p8, %p501_p7 }
  0x2b   : > { %v435_v8 = vpop.eup %434  ;;  %p499_p6 = pneg %p498_p5 }
  0x2c   : > { %v437_v9 = vpop.eup %436  ;;  %v173_v10 = vadd.f32 1.0, %v435_v8 }
  0x2d   : > { %v439_v11 = vpop.eup %438  ;;  %v174_v12 = vadd.f32 1.0, %v437_v9  ;;  %p504_p13 = pnand %p503_p10, %p499_p6 }
  0x2e   : > { %v441_v13 = vpop.eup %440  ;;  %442 = vrcp.f32 %v173_v10  ;;  %v175_v14 = vadd.f32 1.0, %v439_v11  ;;  %v186_v16 = vand.u32 2147483647, %v173_v10  ;;  %v188_v17 = vand.u32 2147483648, %v173_v10 }
  0x2f   : > { %444 = vrcp.f32 %v174_v12  ;;  %v176_v15 = vadd.f32 1.0, %v441_v13  ;;  %v201_v19 = vand.u32 2147483647, %v174_v12  ;;  %v203_v20 = vand.u32 2147483648, %v174_v12 }
  0x30   : > { %446 = vrcp.f32 %v175_v14  ;;  %vm182_vm0 = vweird.f32 %v173_v10  ;;  %vm197_vm2 = vweird.f32 %v174_v12  ;;  %vm662_vm4 = vcmp.eq.f32.partialorder %v186_v16, 8.507059e+37 }
  0x31   : > { %448 = vrcp.f32 %v176_v15  ;;  %v189_v26 = vor.u32 1.1754944e-38, %v188_v17  ;;  %vm666_vm6 = vcmp.eq.f32.partialorder %v201_v19, 8.507059e+37  ;;  %v204_v30 = vor.u32 1.1754944e-38, %v203_v20 }
  0x32   : > { %vm212_vm7 = vweird.f32 %v175_v14  ;;  %v216_v34 = vand.u32 2147483647, %v175_v14  ;;  %v218_v37 = vand.u32 2147483648, %v175_v14  ;;  %vm227_vm9 = vweird.f32 %v176_v15 }
  0x33   : > { %v233_v42 = vand.u32 2147483648, %v176_v15  ;;  %v231_v45 = vand.u32 2147483647, %v176_v15 }
  0x34   : > { %v443_v18 = vpop.eup %442  ;;  %v219_v51 = vor.u32 1.1754944e-38, %v218_v37  ;;  %vm217_vm14 = vcmp.eq.f32.partialorder %v216_v34, 8.507059e+37 }
  0x35   : > { %v445_v21 = vpop.eup %444  ;;  %v178_v22 = vmul.f32 %v443_v18, %v173_v10  ;;  %vm183_vm3 = vweird.f32 %v443_v18  ;;  %v234_v55 = vor.u32 1.1754944e-38, %v233_v42 }
  0x36   : > { %v193_v23 = vmul.f32 %v445_v21, %v174_v12  ;;  %v447_v27 = vpop.eup %446  ;;  %vm198_vm5 = vweird.f32 %v445_v21  ;;  %vm672_vm8 = vmor %vm182_vm0, %vm183_vm3  ;;  %vm232_vm0 = vcmp.eq.f32.partialorder %v231_v45, 8.507059e+37 }
  0x37   : > { %v179_v24 = vsub.f32 1.0, %v178_v22  ;;  %v449_v31 = vpop.eup %448  ;;  %v208_v33 = vmul.f32 %v447_v27, %v175_v14  ;;  %vm678_vm10 = vmor %vm197_vm2, %vm198_vm5  ;;  %vm213_vm11 = vweird.f32 %v447_v27 }
  0x38   : > { %v194_v28 = vsub.f32 1.0, %v193_v23  ;;  %v223_v38 = vmul.f32 %v449_v31, %v176_v15  ;;  %vm228_vm12 = vweird.f32 %v449_v31  ;;  %vm694_vm13 = vmor %vm212_vm7, %vm213_vm11 }
  0x39   : > { %v180_v32 = vmul.f32 %v443_v18, %v179_v24  ;;  %v209_v41 = vsub.f32 1.0, %v208_v33  ;;  %vm229_vm15 = vmor %vm227_vm9, %vm228_vm12 }
  0x3a   : > { %v195_v36 = vmul.f32 %v445_v21, %v194_v28  ;;  %v224_v44 = vsub.f32 1.0, %v223_v38 }
  0x3b   : > { %v181_v39 = vadd.f32 %v443_v18, %v180_v32  ;;  %v210_v47 = vmul.f32 %v447_v27, %v209_v41 }
  0x3c   : > { %v196_v43 = vadd.f32 %v445_v21, %v195_v36  ;;  %v225_v52 = vmul.f32 %v449_v31, %v224_v44 }
  0x3d   : > { %v185_v46 = vsel %vm672_vm8, %v443_v18, %v181_v39  ;;  %v211_v54 = vadd.f32 %v447_v27, %v210_v47 }
  0x3e   : > { %v190_v48 = vsel %vm662_vm4, %v189_v26, %v185_v46  ;;  %v200_v49 = vsel %vm678_vm10, %v445_v21, %v196_v43  ;;  %v226_v56 = vadd.f32 %v449_v31, %v225_v52 }
  0x3f   : > { %238 = vst.msk [vmem:[%s154_s22] sm:$0xff] %vm237_vm1, %v190_v48  ;;  %v205_v53 = vsel %vm666_vm6, %v204_v30, %v200_v49  ;;  %v215_v57 = vsel %vm694_vm13, %v447_v27, %v211_v54 }
  0x40   : > { %239 = vst.msk [vmem:[%s154_s22 + $0x8] sm:$0xff] %vm237_vm1, %v205_v53  ;;  %v220_v58 = vsel %vm217_vm14, %v219_v51, %v215_v57  ;;  %v230_v59 = vsel %vm229_vm15, %v449_v31, %v226_v56 }
  0x41   : > { %240 = vst.msk [vmem:[%s154_s22 + $0x10] sm:$0xff] %vm237_vm1, %v220_v58  ;;  %v235_v60 = vsel %vm232_vm0, %v234_v55, %v230_v59 }
  0x42   : > { %241 = vst.msk [vmem:[%s154_s22 + $0x18] sm:$0xff] %vm237_vm1, %v235_v60 }
  0x43   : > { %507 = shalt.err (!%p504_p13)
}
  0x44   : > { %s566_s4 = smov 128   ;;  %s567_s5 = smov 8  }
  0x45   : > { %370 = dma.vmem_to_hbm [thread:$0]  (%p629_p9), %s258_s23, 512, %s260_s24, %s243_s25, %s566_s4, %s566_s4, %s567_s5  }
  0x46 PF: > { %s274_s12 = sand.u32 1, %s542_s6   ;;  %p377_p0 = pnand %p350_p12, %p636_p11 }
  0x47   : > { %s275_s13 = scalar_lea.sflag [#allocation4], %s274_s12 }
  0x48   : > { %p378_p1 = pneg %p377_p0 }
  0x4a   : > { %537 = dma.done.wait (%p378_p1), %s275_s13, 512  }
  0x4b   : > { %539 = vsyncadd (%p378_p1), %s275_s13, 4294966784  ;;  %s17_s11 = sadd.s32 1, %s562_s11   ;;  %s758_s6 = smov %s546_s7 }
  0x4c   : > { %p14_p2 = scmp.ge.s32.totalorder %s17_s11, 4   ;;  %s759_s7 = smov %s550_s8 }
  0x4d   : > { %s760_s8 = smov %s634_s20  ;;  %s761_s9 = smov %s558_s10 }
  0x4e   : > { %s762_s10 = smov %s764_s14  ;;  %16 = sbr.rel (!%p14_p2) target bundleno = 6 (0x6), region = 69 }
  0x53   :  { %281 = vsyncpa [#allocation3], 1 }
  0x54   :  { %283 = vsyncpa [#allocation3 + $0x1], 1 }
  0x55   :  { %284 = vsyncpa [#allocation4], 1 }
  0x56   :  { %286 = vsyncpa [#allocation4 + $0x1], 1 }

</bundles_post_ra>
